<compile_context>
chip_gen: v7x
topology: tpu7x:2x2x1
jax: 0.10.0
libtpu: 0.0.40
codegen_flags: <defaults>
</compile_context>

<pallas_src>
import math
import jax
import jax.numpy as jnp
from jax import lax
from jax.experimental import pallas as pl
from jax.experimental.pallas import tpu as pltpu


def _round_up(x, m):
    return -(-x // m) * m


def mlp_kernel(x_ref, w1_ref, b1_ref, w2_ref, b2_ref, w3_ref, b3_ref, o_ref):
    """Fused 3-layer MLP on one batch tile, computed *transposed* so every intermediate is
    lane-dense: h1t (16, tb), h2t (8, tb), yt (1, tb).  Weights are in native PyTorch
    [out, in] layout, so the wrapper never transposes weights either."""
    x = x_ref[...]                                                     # (tb, D)  bf16 or f32
    # Layer 1: h1t[o, b] = sum_d W1[o, d] * x[b, d]  — contraction over minor dims, f32 MXU acc.
    h1t = lax.dot_general(
        w1_ref[...], x,
        dimension_numbers=(((1,), (1,)), ((), ())),
        preferred_element_type=jnp.float32)                            # (16, tb)
    h1t = jnp.maximum(h1t + b1_ref[...], 0.0)                          # bias col (16,1), VPU ReLU
    # Layers 2/3: plain [M,K]x[K,N] matmuls on lane-dense activations.
    h2t = jnp.maximum(
        jnp.dot(w2_ref[...], h1t, preferred_element_type=jnp.float32) + b2_ref[...], 0.0)  # (8, tb)
    yt = jnp.dot(w3_ref[...], h2t, preferred_element_type=jnp.float32)                     # (1, tb)
    o_ref[...] = yt + b3_ref[0]                                        # scalar bias from SMEM


def _default_vmem_limit_bytes():
    cap = 128 * 1024 * 1024
    try:
        cap = int(getattr(pltpu.get_tpu_info(), "vmem_capacity_bytes", cap))
    except Exception:
        pass
    # ~half the physical per-core VMEM: 64 MiB on v5e/v6e (128 MiB), 32 MiB on v7x (64 MiB);
    # leaves headroom for compiler scratch (review: stay <= ~48 MiB on v7x).
    return max(16 * 1024 * 1024, min(64 * 1024 * 1024, cap // 2))


def _choose_block_b(batch, feat_dim, vmem_limit_bytes, x_itemsize, num_buffers):
    """Largest power-of-two batch tile (cap 8192, multiple of 128) whose *padded-layout* VMEM
    footprint fits ~half the scoped limit.  Accounts for (8,128) lane/sublane padding and the
    actual pipeline depth."""
    lane_d = _round_up(max(feat_dim, 1), 128)
    per_row = (num_buffers * lane_d * x_itemsize   # x tiles in flight, lanes padded to 128
               + 2 * 8 * 4                         # (1, tb) f32 out blocks, 8-sublane padded, x2 buffers
               + (16 + 8) * 4)                     # f32 transposed intermediates h1t/h2t
    budget = vmem_limit_bytes // 2                 # headroom: weights, compiler scratch, spills
    tb = 8192
    while tb > 128 and tb * per_row > budget:
        tb //= 2
    if batch <= tb:
        tb = max(128, _round_up(batch, 128))       # single tile: keep the lane-dense output unmasked
    return tb


def my_model_forward(x, params, *, block_b=None, vmem_limit_bytes=None,
                     stream_dtype=jnp.bfloat16, buffer_count=None, min_grid_steps=2):
    """x: [B, D] float32 -> [B] float32 (matches `y = self.layers(x); y.squeeze(1)`).

    stream_dtype: dtype used to stream x / W1 from HBM (default bf16 ~halves HBM traffic on the
    bandwidth-bound x read; accumulation stays f32 on the MXU).  Pass None for exact f32."""
    w1, b1, w2, b2, w3, b3 = params
    B, D = x.shape

    if stream_dtype is not None:
        x = x.astype(stream_dtype)
        w1 = w1.astype(stream_dtype)   # layer-1 matmul runs bf16 x bf16 -> f32 on the MXU

    num_buffers = 2 if buffer_count is None else int(buffer_count)
    if vmem_limit_bytes is None:
        vmem_limit_bytes = _default_vmem_limit_bytes()

    if block_b is None:
        tb = _choose_block_b(B, D, vmem_limit_bytes, x.dtype.itemsize, num_buffers)
        # Keep >= min_grid_steps grid steps when the batch allows it, so v7x's two TensorCores
        # both get work (negligible cost on single-TC v5e/v6e).
        if min_grid_steps > 1 and B > min_grid_steps * 128:
            tb = min(tb, max(128, _round_up(-(-B // min_grid_steps), 128)))
    else:
        tb = int(block_b)
    assert tb % 128 == 0, "block_b must be a multiple of 128 (lane-dense output tiling)"

    # Pad ragged batches up to a whole number of tiles; padded rows produce garbage through the
    # bias/ReLU chain but are sliced off below (no in-kernel batch reductions, so this is benign).
    num_tiles = -(-B // tb)
    Bp = num_tiles * tb
    if Bp != B:
        x = jnp.pad(x, ((0, Bp - B), (0, 0)))

    x_spec_kwargs = {}
    if buffer_count is not None:
        x_spec_kwargs["pipeline_mode"] = pl.Buffered(int(buffer_count))   # e.g. 3, optional

    cost = pl.CostEstimate(
        flops=2 * Bp * (D * 16 + 16 * 8 + 8),
        transcendentals=0,
        bytes_accessed=x.dtype.itemsize * Bp * D + 4 * Bp
        + sum(int(p.size) * p.dtype.itemsize for p in (w1, b1, w2, b2, w3, b3)),
    )

    yt = pl.pallas_call(
        mlp_kernel,
        out_shape=jax.ShapeDtypeStruct((num_tiles, tb), jnp.float32),
        grid_spec=pltpu.PrefetchScalarGridSpec(
            num_scalar_prefetch=0,
            grid=(num_tiles,),
            in_specs=[
                pl.BlockSpec((tb, D), lambda i: (i, 0), **x_spec_kwargs),  # x tile (streamed)
                pl.BlockSpec((16, D), lambda i: (0, 0)),                   # W1 [out, in] (resident)
                pl.BlockSpec((16, 1), lambda i: (0, 0)),                   # b1 (column)
                pl.BlockSpec((8, 16), lambda i: (0, 0)),                   # W2 [out, in]
                pl.BlockSpec((8, 1), lambda i: (0, 0)),                    # b2 (column)
                pl.BlockSpec((1, 8), lambda i: (0, 0)),                    # W3 [out, in]
                pl.BlockSpec(memory_space=pltpu.MemorySpace.SMEM),         # b3 scalar in SMEM
            ],
            out_specs=pl.BlockSpec((1, tb), lambda i: (i, 0)),             # lane-dense output row
        ),
        compiler_params=pltpu.CompilerParams(
            dimension_semantics=("parallel",),        # batch tiles shard across v7x's 2 TCs
            vmem_limit_bytes=int(vmem_limit_bytes),
        ),
        cost_estimate=cost,
    )(x, w1, b1, w2, b2, w3, b3)

    # (num_tiles, tb) row-major == batch order; drop padding; matches y.squeeze(1).
    return yt.reshape(Bp)[:B]


def init_params(key, input_dim):
    """PyTorch nn.Linear layout ([out, in] weights) and init: U(-1/sqrt(fan_in), 1/sqrt(fan_in)).
    Layer-1/2 biases stored as columns ([out, 1]) for the transposed kernel; final bias is a
    1-element vector kept in SMEM."""
    shapes = [(16, input_dim), (8, 16), (1, 8)]
    params = []
    for (fan_out, fan_in) in shapes:
        key, kw, kb = jax.random.split(key, 3)
        bound = 1.0 / math.sqrt(fan_in)
        w = jax.random.uniform(kw, (fan_out, fan_in), jnp.float32, -bound, bound)
        b = jax.random.uniform(kb, (fan_out, 1), jnp.float32, -bound, bound)
        params += [w, b]
    w1, b1, w2, b2, w3, b3 = params
    return (w1, b1, w2, b2, w3, b3[:, 0])   # b3 -> shape (1,)


def reference_forward(x, params):
    w1, b1, w2, b2, w3, b3 = params
    h1 = jnp.maximum(x @ w1.T + b1[:, 0], 0.0)
    h2 = jnp.maximum(h1 @ w2.T + b2[:, 0], 0.0)
    return (h2 @ w3.T)[:, 0] + b3[0]


if __name__ == "__main__":
    key = jax.random.PRNGKey(0)
    kx, kp = jax.random.split(key)

    D = 32
    params = init_params(kp, D)

    # 1) Small case consistent with the module (input_dim=32), batch=8 — exact f32 path.
    x = jax.random.normal(kx, (8, D), jnp.float32)
    y = jax.block_until_ready(my_model_forward(x, params, stream_dtype=None))
    y_ref = reference_forward(x, params)
    assert y.shape == (8,)
    assert jnp.allclose(y, y_ref, atol=1e-5, rtol=1e-5)

    # 1b) Same inputs through the default bf16-streaming path (f32 accumulation): looser tolerance.
    y_bf16 = jax.block_until_ready(my_model_forward(x, params))
    assert jnp.allclose(y_bf16, y_ref, atol=2e-2, rtol=2e-2)

    # 2) Ragged multi-tile path (explicit small block, exact f32): 272 rows -> 3 tiles of 128.
    x2 = jax.random.normal(kx, (272, D), jnp.float32)
    y2 = jax.block_until_ready(my_model_forward(x2, params, block_b=128, stream_dtype=None))
    y2_ref = reference_forward(x2, params)
    assert y2.shape == (272,)
    assert jnp.allclose(y2, y2_ref, atol=1e-5, rtol=1e-5)

    # 3) Auto-tiled default path (>=2 grid steps so both v7x TCs get work): 2048 rows -> 2 x 1024.
    x3 = jax.random.normal(kx, (2048, D), jnp.float32)
    y3 = jax.block_until_ready(my_model_forward(x3, params))
    y3_ref = reference_forward(x3, params)
    assert y3.shape == (2048,)
    assert jnp.allclose(y3, y3_ref, atol=2e-2, rtol=2e-2)

    print("KERNEL_OK")
</pallas_src>

<mosaic_0001>
module attributes {stable_mosaic.version = 11 : i64} {
  func.func @mlp_kernel(%arg0: i32, %arg1: memref<128x32xf32, #tpu.memory_space<vmem>>, %arg2: memref<16x32xf32, #tpu.memory_space<vmem>>, %arg3: memref<16x1xf32, #tpu.memory_space<vmem>>, %arg4: memref<8x16xf32, #tpu.memory_space<vmem>>, %arg5: memref<8x1xf32, #tpu.memory_space<vmem>>, %arg6: memref<1x8xf32, #tpu.memory_space<vmem>>, %arg7: memref<1xf32, #tpu.memory_space<smem>>, %arg8: memref<1x128xf32, #tpu.memory_space<vmem>>) attributes {dimension_semantics = [#tpu.dimension_semantics<parallel>], iteration_bounds = array<i64: 1>, scalar_prefetch = 0 : i64, scratch_operands = 0 : i64, tpu.core_type = #tpu.core_type<tc>, window_params = [{transform_indices = @transform_0, window_bounds = array<i64: 128, 32>}, {pipeline_mode = #tpu.pipeline_mode<synchronous>, transform_indices = @transform_1, window_bounds = array<i64: 16, 32>}, {pipeline_mode = #tpu.pipeline_mode<synchronous>, transform_indices = @transform_2, window_bounds = array<i64: 16, 1>}, {pipeline_mode = #tpu.pipeline_mode<synchronous>, transform_indices = @transform_3, window_bounds = array<i64: 8, 16>}, {pipeline_mode = #tpu.pipeline_mode<synchronous>, transform_indices = @transform_4, window_bounds = array<i64: 8, 1>}, {pipeline_mode = #tpu.pipeline_mode<synchronous>, transform_indices = @transform_5, window_bounds = array<i64: 1, 8>}, {transform_indices = @transform_6, window_bounds = array<i64: 1>}, {transform_indices = @transform_7, window_bounds = array<i64: 1, 128>}]} {
    %c0 = arith.constant 0 : index
    %c0_0 = arith.constant 0 : index
    %0 = vector.load %arg1[%c0, %c0_0] : memref<128x32xf32, #tpu.memory_space<vmem>>, vector<128x32xf32>
    %c0_1 = arith.constant 0 : index
    %c0_2 = arith.constant 0 : index
    %1 = vector.load %arg2[%c0_1, %c0_2] : memref<16x32xf32, #tpu.memory_space<vmem>>, vector<16x32xf32>
    %cst = arith.constant dense<0.000000e+00> : vector<16x128xf32>
    %2 = tpu.matmul %1, %0, %cst {dimension_numbers = #tpu.dot_dimension_numbers<[1], [1], [0], [0], [0, 0, 1, 0], [], []>} : vector<16x32xf32>, vector<128x32xf32>, vector<16x128xf32> -> vector<16x128xf32>
    %c0_3 = arith.constant 0 : index
    %c0_4 = arith.constant 0 : index
    %3 = vector.load %arg3[%c0_3, %c0_4] : memref<16x1xf32, #tpu.memory_space<vmem>>, vector<16x1xf32>
    %4 = vector.broadcast %3 : vector<16x1xf32> to vector<16x128xf32>
    %5 = arith.addf %2, %4 : vector<16x128xf32>
    %cst_5 = arith.constant 0.000000e+00 : f32
    %6 = vector.broadcast %cst_5 : f32 to vector<16x128xf32>
    %7 = arith.maximumf %5, %6 : vector<16x128xf32>
    %c0_6 = arith.constant 0 : index
    %c0_7 = arith.constant 0 : index
    %8 = vector.load %arg4[%c0_6, %c0_7] : memref<8x16xf32, #tpu.memory_space<vmem>>, vector<8x16xf32>
    %cst_8 = arith.constant dense<0.000000e+00> : vector<8x128xf32>
    %9 = tpu.matmul %8, %7, %cst_8 {dimension_numbers = #tpu.dot_dimension_numbers<[1], [0], [0], [1], [0, 0, 1, 1], [], []>} : vector<8x16xf32>, vector<16x128xf32>, vector<8x128xf32> -> vector<8x128xf32>
    %c0_9 = arith.constant 0 : index
    %c0_10 = arith.constant 0 : index
    %10 = vector.load %arg5[%c0_9, %c0_10] : memref<8x1xf32, #tpu.memory_space<vmem>>, vector<8x1xf32>
    %11 = vector.broadcast %10 : vector<8x1xf32> to vector<8x128xf32>
    %12 = arith.addf %9, %11 : vector<8x128xf32>
    %cst_11 = arith.constant 0.000000e+00 : f32
    %13 = vector.broadcast %cst_11 : f32 to vector<8x128xf32>
    %14 = arith.maximumf %12, %13 : vector<8x128xf32>
    %c0_12 = arith.constant 0 : index
    %c0_13 = arith.constant 0 : index
    %15 = vector.load %arg6[%c0_12, %c0_13] : memref<1x8xf32, #tpu.memory_space<vmem>>, vector<1x8xf32>
    %cst_14 = arith.constant dense<0.000000e+00> : vector<1x128xf32>
    %16 = tpu.matmul %15, %14, %cst_14 {dimension_numbers = #tpu.dot_dimension_numbers<[1], [0], [0], [1], [0, 0, 1, 1], [], []>} : vector<1x8xf32>, vector<8x128xf32>, vector<1x128xf32> -> vector<1x128xf32>
    %c0_15 = arith.constant 0 : index
    %17 = memref.load %arg7[%c0_15] : memref<1xf32, #tpu.memory_space<smem>>
    %18 = vector.broadcast %17 : f32 to vector<1x128xf32>
    %19 = arith.addf %16, %18 : vector<1x128xf32>
    %c0_16 = arith.constant 0 : index
    %c0_17 = arith.constant 0 : index
    %20 = vector.load %arg8[%c0_16, %c0_17] : memref<1x128xf32, #tpu.memory_space<vmem>>, vector<1x128xf32>
    tpu.vector_store %arg8[%c0_16, %c0_17], %19 {strides = array<i32>} : memref<1x128xf32, #tpu.memory_space<vmem>>, vector<1x128xf32>,
    return
  }
  func.func @transform_0(%arg0: i32) -> (i32, i32) {
    %c0_i32 = arith.constant 0 : i32
    %c0_i32_0 = arith.constant 0 : i32
    return %arg0, %c0_i32 : i32, i32
  }
  func.func @transform_1(%arg0: i32) -> (i32, i32) {
    %c0_i32 = arith.constant 0 : i32
    %c0_i32_0 = arith.constant 0 : i32
    %c0_i32_1 = arith.constant 0 : i32
    return %c0_i32, %c0_i32_0 : i32, i32
  }
  func.func @transform_2(%arg0: i32) -> (i32, i32) {
    %c0_i32 = arith.constant 0 : i32
    %c0_i32_0 = arith.constant 0 : i32
    %c0_i32_1 = arith.constant 0 : i32
    return %c0_i32, %c0_i32_0 : i32, i32
  }
  func.func @transform_3(%arg0: i32) -> (i32, i32) {
    %c0_i32 = arith.constant 0 : i32
    %c0_i32_0 = arith.constant 0 : i32
    %c0_i32_1 = arith.constant 0 : i32
    return %c0_i32, %c0_i32_0 : i32, i32
  }
  func.func @transform_4(%arg0: i32) -> (i32, i32) {
    %c0_i32 = arith.constant 0 : i32
    %c0_i32_0 = arith.constant 0 : i32
    %c0_i32_1 = arith.constant 0 : i32
    return %c0_i32, %c0_i32_0 : i32, i32
  }
  func.func @transform_5(%arg0: i32) -> (i32, i32) {
    %c0_i32 = arith.constant 0 : i32
    %c0_i32_0 = arith.constant 0 : i32
    %c0_i32_1 = arith.constant 0 : i32
    return %c0_i32, %c0_i32_0 : i32, i32
  }
  func.func @transform_6(%arg0: i32) -> i32 {
    %c0_i32 = arith.constant 0 : i32
    %c0_i32_0 = arith.constant 0 : i32
    return %c0_i32 : i32
  }
  func.func @transform_7(%arg0: i32) -> (i32, i32) {
    %c0_i32 = arith.constant 0 : i32
    %c0_i32_0 = arith.constant 0 : i32
    return %arg0, %c0_i32 : i32, i32
  }
}

</mosaic_0001>

<bundles_post_ra>
// kernel: tpu_custom_call.1
= control target key start
LH: loop header
LB: loop body
LE: loop exit
PB: predicated region body
PF: predicated region fallthrough
CT: control target
= control target key end

     0   :  { %13 = vsyncpa [#allocation4], 0  ;;  %s962_s0 = inlined_call_operand.hbm [shape: f32[128,32], index: 0, kind: input, shape index: {}]   ;;  %s963_s1 = inlined_call_operand.hbm [shape: f32[16,32], index: 1, kind: input, shape index: {}]   ;;  %s964_s2 = inlined_call_operand.hbm [shape: f32[16,1], index: 2, kind: input, shape index: {}]   ;;  %s965_s3 = inlined_call_operand.hbm [shape: f32[8,16], index: 3, kind: input, shape index: {}]   ;;  %s966_s4 = inlined_call_operand.hbm [shape: f32[8,1], index: 4, kind: input, shape index: {}]   ;;  %s967_s5 = inlined_call_operand.hbm [shape: f32[1,8], index: 5, kind: input, shape index: {}]   ;;  %s968_s6 = inlined_call_operand.<no memory space> [shape: f32[1], index: 6, kind: input, shape index: {}]   ;;  %s969_s7 = inlined_call_operand.hbm [shape: f32[1,128], index: 7, kind: output, shape index: {}]  }
   0x1   :  { %14 = vsyncpa [#allocation7], 0 }
   0x2   :  { %15 = vsyncpa [#allocation10], 0 }
   0x3   :  { %16 = vsyncpa [#allocation13], 0 }
   0x4   :  { %17 = vsyncpa [#allocation5], 0  ;;  %s764_s24 = smov [#allocation6]   ;;  %s765_s26 = smov [#allocation9]  }
   0x5   :  { %s35_s25 = sshll.u32 %s764_s24, 4  ;;  %s60_s27 = sshll.u32 %s765_s26, 4  ;;  %s36_s25 = int_to_ptr.vmem [resolvable:$true] %s35_s25  ;;  %s61_s27 = int_to_ptr.vmem [resolvable:$true] %s60_s27 }
   0x6   :  { %s600_s30 = scalar_lea.hbm %s963_s1, 256 }
   0x7   :  { %p601_p0 = scmp.ne.s32.totalorder %s963_s1, %s600_s30  ;;  %p604_p1 = scmp.lt.u32.totalorder %s600_s30, %s963_s1 }
   0x9   :  { %p606_p2 = pnand %p604_p1, %p601_p0 }
   0xb   :  { %609 = shalt.err (!%p606_p2)
}
   0xc   :  { %s610_s12 = scalar_lea.vmem %s36_s25, 256  ;;  %p615_p4 = scmp.lt.s32.totalorder %s36_s25, %s36_s25 }
   0xd   :  { %p611_p3 = scmp.ne.s32.totalorder %s36_s25, %s610_s12  ;;  %p616_p5 = scmp.lt.s32.totalorder %s610_s12, %s610_s12 }
   0xf   :  { %p617_p6 = por %p616_p5, %p615_p4 }
  0x11   :  { %p618_p7 = pnand %p617_p6, %p611_p3 }
  0x13   :  { %621 = shalt.err (!%p618_p7)
}
  0x14   :  { %s766_s13 = smov 128   ;;  %s767_s14 = smov 8  }
  0x15   :  { %41 = dma.hbm_to_vmem [thread:$0]  %s963_s1, 256, %s36_s25, [#allocation7], %s766_s13, %s766_s13, %s767_s14  }
  0x16   :  { %s622_s19 = scalar_lea.hbm %s965_s3, 128 }
  0x17   :  { %p623_p8 = scmp.ne.s32.totalorder %s965_s3, %s622_s19  ;;  %p626_p9 = scmp.lt.u32.totalorder %s622_s19, %s965_s3 }
  0x19   :  { %p628_p10 = pnand %p626_p9, %p623_p8 }
  0x1b   :  { %631 = shalt.err (!%p628_p10)
}
  0x1c   :  { %s632_s24 = scalar_lea.vmem %s61_s27, 128  ;;  %p637_p12 = scmp.lt.s32.totalorder %s61_s27, %s61_s27 }
  0x1d   :  { %p633_p11 = scmp.ne.s32.totalorder %s61_s27, %s632_s24  ;;  %p638_p13 = scmp.lt.s32.totalorder %s632_s24, %s632_s24 }
  0x1f   :  { %p639_p0 = por %p638_p13, %p637_p12 }
  0x21   :  { %p640_p1 = pnand %p639_p0, %p633_p11 }
  0x23   :  { %643 = shalt.err (!%p640_p1)
}
  0x24   :  { %63 = dma.hbm_to_vmem [thread:$0]  %s965_s3, 128, %s61_s27, [#allocation10]  }
  0x25   :  { %s768_s26 = smov [#allocation3]   ;;  %s769_s29 = smov [#allocation8]  }
  0x26   :  { %s23_s28 = sshll.u32 %s768_s26, 4  ;;  %s47_s30 = sshll.u32 %s769_s29, 4  ;;  %s24_s28 = int_to_ptr.vmem [resolvable:$true] %s23_s28  ;;  %s844_s30 = int_to_ptr.vmem [resolvable:$true] %s47_s30 }
  0x27   :  { %s644_s10 = scalar_lea.hbm %s962_s0, 2048 }
  0x28   :  { %p645_p2 = scmp.ne.s32.totalorder %s962_s0, %s644_s10  ;;  %p648_p3 = scmp.lt.u32.totalorder %s644_s10, %s962_s0 }
  0x2a   :  { %p650_p4 = pnand %p648_p3, %p645_p2 }
  0x2c   :  { %653 = shalt.err (!%p650_p4)
}
  0x2d   :  { %s654_s3 = scalar_lea.vmem %s24_s28, 2048  ;;  %p659_p6 = scmp.lt.s32.totalorder %s24_s28, %s24_s28 }
  0x2e   :  { %p655_p5 = scmp.ne.s32.totalorder %s24_s28, %s654_s3  ;;  %p660_p7 = scmp.lt.s32.totalorder %s654_s3, %s654_s3 }
  0x30   :  { %p661_p8 = por %p660_p7, %p659_p6 }
  0x32   :  { %p662_p9 = pnand %p661_p8, %p655_p5 }
  0x34   :  { %665 = shalt.err (!%p662_p9)
}
  0x35   :  { %29 = dma.hbm_to_vmem [thread:$0]  %s962_s0, 2048, %s24_s28, [#allocation4], %s766_s13, %s766_s13, %s767_s14  }
  0x36   :  { %s666_s20 = scalar_lea.hbm %s964_s2, 256 }
  0x37   :  { %p667_p10 = scmp.ne.s32.totalorder %s964_s2, %s666_s20  ;;  %p670_p11 = scmp.lt.u32.totalorder %s666_s20, %s964_s2 }
  0x39   :  { %p672_p12 = pnand %p670_p11, %p667_p10 }
  0x3b   :  { %675 = shalt.err (!%p672_p12)
}
  0x3c   :  { %s676_s1 = scalar_lea.vmem %s844_s30, 256  ;;  %p681_p0 = scmp.lt.s32.totalorder %s844_s30, %s844_s30 }
  0x3d   :  { %p677_p13 = scmp.ne.s32.totalorder %s844_s30, %s676_s1  ;;  %p682_p1 = scmp.lt.s32.totalorder %s676_s1, %s676_s1 }
  0x3f   :  { %p683_p2 = por %p682_p1, %p681_p0 }
  0x41   :  { %p684_p3 = pnand %p683_p2, %p677_p13 }
  0x43   :  { %687 = shalt.err (!%p684_p3)
}
  0x44   :  { %53 = dma.hbm_to_vmem [thread:$0]  %s964_s2, 256, %s844_s30, [#allocation7], %s766_s13, %s766_s13, %s767_s14  }
  0x45   :  { %s770_s26 = smov [#allocation11]   ;;  %s771_s29 = smov [#allocation12]  }
  0x46   :  { %s70_s28 = sshll.u32 %s770_s26, 4  ;;  %s80_s8 = sshll.u32 %s771_s29, 4  ;;  %s71_s28 = int_to_ptr.vmem [resolvable:$true] %s70_s28  ;;  %s81_s8 = int_to_ptr.vmem [resolvable:$true] %s80_s8 }
  0x47   :  { %s688_s11 = scalar_lea.hbm %s966_s4, 128 }
  0x48   :  { %p689_p4 = scmp.ne.s32.totalorder %s966_s4, %s688_s11  ;;  %p692_p5 = scmp.lt.u32.totalorder %s688_s11, %s966_s4 }
  0x4a   :  { %p694_p6 = pnand %p692_p5, %p689_p4 }
  0x4c   :  { %697 = shalt.err (!%p694_p6)
}
  0x4d   :  { %s698_s2 = scalar_lea.vmem %s71_s28, 128  ;;  %p703_p8 = scmp.lt.s32.totalorder %s71_s28, %s71_s28 }
  0x4e   :  { %p699_p7 = scmp.ne.s32.totalorder %s71_s28, %s698_s2  ;;  %p704_p9 = scmp.lt.s32.totalorder %s698_s2, %s698_s2 }
  0x50   :  { %p705_p10 = por %p704_p9, %p703_p8 }
  0x52   :  { %p706_p11 = pnand %p705_p10, %p699_p7 }
  0x54   :  { %709 = shalt.err (!%p706_p11)
}
  0x55   :  { %73 = dma.hbm_to_vmem [thread:$0]  %s966_s4, 128, %s71_s28, [#allocation10]  }
  0x56   :  { %s710_s17 = scalar_lea.hbm %s967_s5, 16 }
  0x57   :  { %p711_p12 = scmp.ne.s32.totalorder %s967_s5, %s710_s17  ;;  %p714_p13 = scmp.lt.u32.totalorder %s710_s17, %s967_s5 }
  0x59   :  { %p716_p0 = pnand %p714_p13, %p711_p12 }
  0x5b   :  { %719 = shalt.err (!%p716_p0)
}
  0x5c   :  { %s720_s22 = scalar_lea.vmem %s81_s8, 16  ;;  %s724_s23 = scalar_lea.vmem %s81_s8, 32 }
  0x5d   :  { %p721_p1 = scmp.ne.s32.totalorder %s81_s8, %s720_s22  ;;  %p725_p2 = scmp.lt.s32.totalorder %s81_s8, %s81_s8 }
  0x5e   :  { %p726_p3 = scmp.lt.s32.totalorder %s724_s23, %s720_s22 }
  0x60   :  { %p727_p4 = por %p726_p3, %p725_p2 }
  0x62   :  { %p728_p5 = pnand %p727_p4, %p721_p1 }
  0x64   :  { %731 = shalt.err (!%p728_p5)
}
  0x65   :  { %83 = dma.hbm_to_vmem [thread:$0]  %s967_s5, 16, %s81_s8, [#allocation13]  }
  0x66   :  { %754 = dma.done.wait [#allocation4], 2048  }
  0x67   :  { %755 = vsyncadd [#allocation4], 4294965248 }
  0x68   :  { %756 = dma.done.wait [#allocation7], 512  }
  0x69   :  { %757 = vsyncadd [#allocation7], 4294966784 }
  0x6a   :  { %758 = dma.done.wait [#allocation10], 256  }
  0x6b   :  { %759 = vsyncadd [#allocation10], 4294967040 }
  0x6c   :  { %760 = dma.done.wait [#allocation13], 16  }
  0x6d   :  { %761 = vsyncadd [#allocation13], 4294967280  ;;  %v772_v0 = vmov 0   ;;  %vm134_vm0 = vcmask 261120   ;;  %v104_v2 = vld [vmem:[#allocation3] sm:$0xff]  ;;  %v105_v3 = vld [vmem:[#allocation3 + $0x8] sm:$0xff]  ;;  %v350_v49 = vstv %s968_s6 }
  0x6e   :  { %598 = vset.pattern.permute.xlu0 %v772_v0  ;;  %599 = vset.pattern.permute.xlu1 %v772_v0  ;;  %vm907_vm1 = vmpackc.low %vm134_vm0, %vm134_vm0  ;;  %v106_v4 = vld [vmem:[#allocation3 + $0x10] sm:$0xff]  ;;  %v534_v5 = vpack.c.bf16 %v105_v3, %v104_v2  ;;  %v107_v6 = vld [vmem:[#allocation3 + $0x18] sm:$0xff]  ;;  %v773_v30 = vmov 0.0|0.0   ;;  %vm774_vm2 = vmmov 0   ;;  %v775_v31 = vmov 0.0   ;;  %s776_s0 = smov [#allocation14]  }
  0x6f   :  { %v540_v7 = vpack.c.bf16 %v107_v6, %v106_v4  ;;  %v120_v8 = vld [vmem:[#allocation6] sm:$0xff]  ;;  %v109_v10 = vld [vmem:[#allocation3 + $0x28] sm:$0xff]  ;;  %v122_v11 = vld [vmem:[#allocation8] sm:$0xff]  ;;  %582 = vmatprep.subr.bf16.mxu1 %v773_v30  ;;  %526 = vmatprep.mubr.msk.f32.mxu1 %vm774_vm2, %v775_v31  ;;  %vm273_vm3 = vcmask 130048   ;;  %vm351_vm4 = vcmask 64512   ;;  %s432_s25 = sshll.u32 %s776_s0, 4  ;;  %s433_s25 = int_to_ptr.vmem [resolvable:$true] %s432_s25 }
  0x70   :  { %536 = vmatprep.subr.msk.bf16.mxu0 %vm907_vm1, %v534_v5  ;;  %v108_v9 = vld [vmem:[#allocation3 + $0x20] sm:$0xff]  ;;  %519 = vmatprep.mubr.msk.f32.mxu0 %vm134_vm0, %v120_v8  ;;  %v123_v12 = vld [vmem:[#allocation8 + $0x8] sm:$0xff]  ;;  %v110_v14 = vld [vmem:[#allocation3 + $0x30] sm:$0xff]  ;;  %s732_s26 = scalar_lea.vmem %s433_s25, 16  ;;  %s736_s28 = scalar_lea.vmem %s433_s25, 32 }
  0x71   :  { %539 = vmatpush3.bf16.xpose.msk.msra.mxu0 %vm907_vm1, %v534_v5  ;;  %126 = vperm.xlu0 %598, %v122_v11   ;;  %v546_v13 = vpack.c.bf16 %v109_v10, %v108_v9  ;;  %v111_v15 = vld [vmem:[#allocation3 + $0x38] sm:$0xff]  ;;  %v112_v17 = vld [vmem:[#allocation3 + $0x40] sm:$0xff]  ;;  %v113_v18 = vld [vmem:[#allocation3 + $0x48] sm:$0xff]  ;;  %p733_p6 = scmp.ne.s32.totalorder %s433_s25, %s732_s26  ;;  %p737_p7 = scmp.lt.s32.totalorder %s433_s25, %s433_s25 }
  0x72   :  { %542 = vmatprep.subr.msk.bf16.mxu0 %vm907_vm1, %v540_v7  ;;  %v552_v16 = vpack.c.bf16 %v111_v15, %v110_v14  ;;  %v558_v19 = vpack.c.bf16 %v113_v18, %v112_v17  ;;  %v114_v20 = vld [vmem:[#allocation3 + $0x50] sm:$0xff]  ;;  %v115_v21 = vld [vmem:[#allocation3 + $0x58] sm:$0xff]  ;;  %v116_v23 = vld [vmem:[#allocation3 + $0x60] sm:$0xff]  ;;  %p738_p8 = scmp.lt.s32.totalorder %s736_s28, %s732_s26 }
  0x73   :  { %v564_v22 = vpack.c.bf16 %v115_v21, %v114_v20  ;;  %v117_v24 = vld [vmem:[#allocation3 + $0x68] sm:$0xff]  ;;  %v118_v26 = vld [vmem:[#allocation3 + $0x70] sm:$0xff]  ;;  %v119_v27 = vld [vmem:[#allocation3 + $0x78] sm:$0xff] }
  0x74   :  { %v570_v25 = vpack.c.bf16 %v117_v24, %v116_v23  ;;  %v576_v28 = vpack.c.bf16 %v119_v27, %v118_v26  ;;  %v121_v29 = vld [vmem:[#allocation6 + $0x8] sm:$0xff]  ;;  %v266_v42 = vld [vmem:[#allocation9] sm:$0xff]  ;;  %v348_v48 = vld [vmem:[#allocation12] sm:$0x1]  ;;  %p739_p9 = por %p738_p8, %p737_p7 }
  0x75   :  { %131 = vperm.xlu0 %598, %v123_v12   ;;  %v267_v32 = vld [vmem:[#allocation11] sm:$0xff] }
  0x76   :  { %270 = vperm.xlu1 %599, %v267_v32   ;;  %p740_p10 = pnand %p739_p9, %p733_p6 }
  0x79   :  { %545 = vmatpush3.bf16.xpose.msk.msra.mxu0 %vm907_vm1, %v540_v7 }
  0x7a   :  { %548 = vmatprep.subr.msk.bf16.mxu0 %vm907_vm1, %v546_v13 }
  0x81   :  { %551 = vmatpush3.bf16.xpose.msk.msra.mxu0 %vm907_vm1, %v546_v13 }
  0x82   :  { %554 = vmatprep.subr.msk.bf16.mxu0 %vm907_vm1, %v552_v16 }
  0x89   :  { %557 = vmatpush3.bf16.xpose.msk.msra.mxu0 %vm907_vm1, %v552_v16 }
  0x8a   :  { %560 = vmatprep.subr.msk.bf16.mxu0 %vm907_vm1, %v558_v19 }
  0x91   :  { %563 = vmatpush3.bf16.xpose.msk.msra.mxu0 %vm907_vm1, %v558_v19 }
  0x92   :  { %566 = vmatprep.subr.msk.bf16.mxu0 %vm907_vm1, %v564_v22 }
  0x99   :  { %569 = vmatpush3.bf16.xpose.msk.msra.mxu0 %vm907_vm1, %v564_v22 }
  0x9a   :  { %572 = vmatprep.subr.msk.bf16.mxu0 %vm907_vm1, %v570_v25 }
  0xa1   :  { %575 = vmatpush3.bf16.xpose.msk.msra.mxu0 %vm907_vm1, %v570_v25 }
  0xa2   :  { %578 = vmatprep.subr.msk.bf16.mxu0 %vm907_vm1, %v576_v28 }
  0xa9   :  { %581 = vmatpush3.bf16.xpose.msk.msra.mxu0 %vm907_vm1, %v576_v28 }
  0xb0   :  { %520 = vmatmul.mubr.msk.f32.vlgmr.msra.gmra.mrb[0].mxu0 %vm134_vm0, %v121_v29 }
  0xf0   :  { %v127_v33 = vpop.permute.xlu0 %126 }
  0xf4   :  { %v132_v34 = vpop.permute.xlu0 %131 }
  0xf5   :  { %v271_v43 = vpop.permute.xlu1 %270 }
 0x183   :  { %v521_v35 = vpop.f32.mrb[0].mxu0 }
 0x184   :  { %v261_v36 = vadd.f32 %v521_v35, %v132_v34  ;;  %v255_v37 = vpop.f32.mrb[1].mxu0 }
 0x185   :  { %v256_v38 = vadd.f32 %v255_v37, %v127_v33 }
 0x186   :  { %v265_v39 = vmax.f32 %v261_v36, 0.0 }
 0x187   :  { %v264_v40 = vmax.f32 %v256_v38, 0.0 }
 0x189   :  { %v583_v41 = vpack.c.bf16 %v265_v39, %v264_v40 }
 0x18b   :  { %584 = vmatpush3.bf16.msra.mxu1 %v583_v41 }
 0x18c   :  { %529 = vmatprep.subr.mxu1 %v775_v31 }
 0x18e   :  { %527 = vmatmul.mubr.msk.f32.vlgmr.msra.gmra.mrb[0].mxu1 %vm273_vm3, %v266_v42 }
 0x18f   :  { %531 = vmatprep.mubr.msk.f32.mxu1 %vm774_vm2, %v775_v31 }
 0x261   :  { %v343_v44 = vpop.f32.mrb[0].mxu1 }
 0x262   :  { %v344_v45 = vadd.f32 %v343_v44, %v271_v43  ;;  %v528_v46 = vpop.f32.mrb[1].mxu1 }
 0x264   :  { %v347_v47 = vmax.f32 %v344_v45, 0.0 }
 0x266   :  { %530 = vmatpush3.msra.mxu1 %v347_v47 }
 0x267   :  { %532 = vmatmul.mubr.msk.f32.vlgmr.msra.gmra.mrb[2].mxu1 %vm351_vm4, %v348_v48 }
 0x33a   :  { %v421_v50 = vpop.f32.mrb[2].mxu1 }
 0x33b   :  { %v422_v51 = vadd.f32 %v421_v50, %v350_v49  ;;  %v533_v52 = vpop.f32.mrb[3].mxu1 }
 0x33d   :  { %425 = vst [vmem:[#allocation14] sm:$0x1] %v422_v51 }
 0x33e   :  { %743 = shalt.err (!%p740_p10)
}
 0x33f   :  { %s744_s9 = scalar_lea.hbm %s969_s7, 16 }
 0x340   :  { %p745_p11 = scmp.ne.s32.totalorder %s969_s7, %s744_s9  ;;  %p748_p12 = scmp.lt.u32.totalorder %s744_s9, %s969_s7 }
 0x342   :  { %p750_p13 = pnand %p748_p12, %p745_p11 }
 0x344   :  { %753 = shalt.err (!%p750_p13)
}
 0x345   :  { %435 = dma.vmem_to_hbm [thread:$0]  %s433_s25, 16, %s969_s7, [#allocation5]  }
 0x346   :  { %762 = dma.done.wait [#allocation5], 16  }
 0x347   :  { %763 = vsyncadd [#allocation5], 4294967280 }
 0x348   :  { %439 = vsyncpa [#allocation4], 1 }
 0x349   :  { %440 = vsyncpa [#allocation7], 1 }
 0x34a   :  { %441 = vsyncpa [#allocation10], 1 }
 0x34b   :  { %442 = vsyncpa [#allocation13], 1 }
 0x34c   :  { %443 = vsyncpa [#allocation5], 1 }

</bundles_post_ra>
